<compile_context>
chip_gen: v7x
topology: tpu7x:2x2x1
jax: 0.10.0
libtpu: 0.0.40
codegen_flags: <defaults>
</compile_context>

<pallas_src>
import math

import jax
import jax.numpy as jnp
from jax.experimental import pallas as pl
from jax.experimental.pallas import tpu as pltpu


# --------------------------------------------------------------------------
# Generation-aware knobs
# --------------------------------------------------------------------------
def _vmem_limit_bytes():
    try:
        cap = pltpu.get_tpu_info().vmem_capacity_bytes
        return int(min(64 * 1024 * 1024, cap // 2))
    except Exception:
        return 32 * 1024 * 1024


_VMEM_LIMIT = _vmem_limit_bytes()


def _tile(n, target):
    """Largest divisor of n that is <= target (prefer 256/128/8-aligned tiles)."""
    if n <= target:
        return n
    for align in (256, 128, 8, 1):
        t = (target // align) * align
        while t >= align:
            if n % t == 0:
                return t
            t -= align
    return n


# --------------------------------------------------------------------------
# K1: masked_fill + LayerNorm0 + Q projection (fused)
# --------------------------------------------------------------------------
def mask_ln_q_kernel(x_ref, m_ref, g_ref, b_ref, wq_ref, bq_ref, x0_ref, q_ref):
    x = x_ref[...]                                # (tm, D) f32
    mrow = m_ref[...]                             # (tm, 1) f32 (nonzero == masked)
    x0 = jnp.where(mrow != 0.0, jnp.float32(-1e9), x)
    mu = jnp.mean(x0, axis=-1, keepdims=True)
    xc = x0 - mu
    var = jnp.mean(xc * xc, axis=-1, keepdims=True)
    ln = (xc * jax.lax.rsqrt(var + jnp.float32(1e-12))) * g_ref[...] + b_ref[...]
    q = jnp.dot(ln.astype(jnp.bfloat16), wq_ref[...],
                preferred_element_type=jnp.float32) + bq_ref[...]
    x0_ref[...] = x0
    q_ref[...] = q.astype(q_ref.dtype)


def pallas_mask_ln_q(x2d, mask_col, gamma, beta, wqT, bq):
    M, D = x2d.shape
    tm = _tile(M, 256)
    row = lambda i: (i, 0)
    full = lambda i: (0, 0)
    return pl.pallas_call(
        mask_ln_q_kernel,
        out_shape=(jax.ShapeDtypeStruct((M, D), jnp.float32),
                   jax.ShapeDtypeStruct((M, D), jnp.bfloat16)),
        grid=(M // tm,),
        in_specs=[
            pl.BlockSpec((tm, D), row),          # text rows (f32)
            pl.BlockSpec((tm, 1), row),          # text mask column
            pl.BlockSpec((1, D), full),          # gamma0
            pl.BlockSpec((1, D), full),          # beta0
            pl.BlockSpec((D, D), full),          # Wq^T (bf16)
            pl.BlockSpec((1, D), full),          # bq
        ],
        out_specs=(pl.BlockSpec((tm, D), row),   # residual base (f32)
                   pl.BlockSpec((tm, D), row)),  # Q (bf16)
        compiler_params=pltpu.CompilerParams(
            dimension_semantics=("parallel",), vmem_limit_bytes=_VMEM_LIMIT),
    )(x2d, mask_col, gamma.reshape(1, D), beta.reshape(1, D), wqT, bq.reshape(1, D))


# --------------------------------------------------------------------------
# K2: cross attention with fused K/V projection, all heads per grid step,
#     merged-head lane-dense output
# --------------------------------------------------------------------------
def make_attention_kernel(num_heads, d_k, d_model):
    scale = 1.0 / math.sqrt(d_k)

    def attention_kernel(q_ref, img_ref, wkv_ref, bkv_ref, m_ref, o_ref):
        q = q_ref[0]                              # (S_q, D)   bf16
        img = img_ref[0]                          # (S_k, D)   bf16
        # Fused K/V projection: one MXU pass over the image features.
        kv = (jnp.dot(img, wkv_ref[...], preferred_element_type=jnp.float32)
              + bkv_ref[...]).astype(jnp.bfloat16)                # (S_k, 2D)
        m = m_ref[0]                              # (1, S_k)    f32, 1 = attend
        parts = []
        for h in range(num_heads):
            lo = h * d_k
            qh = q[:, lo:lo + d_k]                                # (S_q, d_k)
            kh = kv[:, lo:lo + d_k]                               # (S_k, d_k)
            vh = kv[:, d_model + lo:d_model + lo + d_k]           # (S_k, d_k)
            # q @ k^T without an explicit transpose: contract the d_k axes.
            s = jax.lax.dot_general(
                qh, kh, (((1,), (1,)), ((), ())),
                preferred_element_type=jnp.float32) * scale       # (S_q, S_k)
            s = jnp.where(m == 0.0, jnp.float32(-1e9), s)         # mask==0 -> -1e9
            s = s - jnp.max(s, axis=-1, keepdims=True)
            e = jnp.exp(s)
            p = e * pl.reciprocal(jnp.sum(e, axis=-1, keepdims=True), approx=True)
            parts.append(jnp.dot(p.astype(jnp.bfloat16), vh,
                                 preferred_element_type=jnp.float32))
        # Single lane-dense (S_q, H*d_k) store.
        o_ref[0] = jnp.concatenate(parts, axis=-1).astype(o_ref.dtype)

    return attention_kernel


def pallas_cross_attention(q, image_bf16, wkvT, bkv, mask, num_heads):
    B, S_q, D = q.shape
    S_k = image_bf16.shape[1]
    d_k = D // num_heads
    return pl.pallas_call(
        make_attention_kernel(num_heads, d_k, D),
        out_shape=jax.ShapeDtypeStruct((B, S_q, D), jnp.bfloat16),
        grid=(B,),
        in_specs=[
            pl.BlockSpec((1, S_q, D), lambda b: (b, 0, 0)),       # Q (bf16)
            pl.BlockSpec((1, S_k, D), lambda b: (b, 0, 0)),       # image (bf16)
            pl.BlockSpec((D, 2 * D), lambda b: (0, 0)),           # [Wk|Wv]^T (bf16)
            pl.BlockSpec((1, 2 * D), lambda b: (0, 0)),           # [bk|bv]
            pl.BlockSpec((1, 1, S_k), lambda b: (b, 0, 0)),       # image mask
        ],
        out_specs=pl.BlockSpec((1, S_q, D), lambda b: (b, 0, 0)),
        compiler_params=pltpu.CompilerParams(
            dimension_semantics=("parallel",), vmem_limit_bytes=_VMEM_LIMIT),
    )(q, image_bf16, wkvT, bkv.reshape(1, 2 * D), mask)


# --------------------------------------------------------------------------
# K3: attention output-proj + residual + LayerNorm1 + FFN + residual (fused)
# --------------------------------------------------------------------------
def epilogue_kernel(ctx_ref, x0_ref, woT_ref, bo_ref, g_ref, be_ref,
                    w1T_ref, b1_ref, w2T_ref, b2_ref, o_ref):
    attn = jnp.dot(ctx_ref[...], woT_ref[...],
                   preferred_element_type=jnp.float32) + bo_ref[...]
    x1 = x0_ref[...] + attn                               # residual 1 (f32)
    mu = jnp.mean(x1, axis=-1, keepdims=True)
    xc = x1 - mu
    var = jnp.mean(xc * xc, axis=-1, keepdims=True)
    ln = (xc * jax.lax.rsqrt(var + jnp.float32(1e-12))) * g_ref[...] + be_ref[...]
    h = jnp.dot(ln.astype(jnp.bfloat16), w1T_ref[...],
                preferred_element_type=jnp.float32) + b1_ref[...]
    h = jnp.maximum(h, 0.0)                               # ReLU
    ff = jnp.dot(h.astype(jnp.bfloat16), w2T_ref[...],
                 preferred_element_type=jnp.float32) + b2_ref[...]
    o_ref[...] = (x1 + ff).astype(o_ref.dtype)            # residual 2


def pallas_attn_out_ffn(ctx2d, x0_2d, woT, bo, gamma, beta, w1T, b1, w2T, b2):
    M, D = ctx2d.shape
    d_ff = w1T.shape[1]
    tm = _tile(M, 256)
    row = lambda i: (i, 0)
    full = lambda i: (0, 0)
    return pl.pallas_call(
        epilogue_kernel,
        out_shape=jax.ShapeDtypeStruct((M, D), jnp.float32),
        grid=(M // tm,),
        in_specs=[
            pl.BlockSpec((tm, D), row),          # ctx (bf16)
            pl.BlockSpec((tm, D), row),          # residual base (f32)
            pl.BlockSpec((D, D), full),          # Wo^T (bf16)
            pl.BlockSpec((1, D), full),          # bo
            pl.BlockSpec((1, D), full),          # gamma1
            pl.BlockSpec((1, D), full),          # beta1
            pl.BlockSpec((D, d_ff), full),       # W1^T (bf16)
            pl.BlockSpec((1, d_ff), full),       # b1
            pl.BlockSpec((d_ff, D), full),       # W2^T (bf16)
            pl.BlockSpec((1, D), full),          # b2
        ],
        out_specs=pl.BlockSpec((tm, D), row),
        compiler_params=pltpu.CompilerParams(
            dimension_semantics=("parallel",), vmem_limit_bytes=_VMEM_LIMIT),
    )(ctx2d, x0_2d, woT, bo.reshape(1, D), gamma.reshape(1, D), beta.reshape(1, D),
      w1T, b1.reshape(1, d_ff), w2T, b2.reshape(1, D))


# --------------------------------------------------------------------------
# Full DecoderLayer forward (eval mode)
# --------------------------------------------------------------------------
def decoder_layer_forward(params, text, image, text_mask, image_mask=None,
                          num_heads=4):
    """text: (B, S_t, D) f32; image: (B, S_i, D) f32;
    text_mask: (B, S_t) bool/int, True/1 = mask the text token row out;
    image_mask: optional (B, S_i), 1 = attend, 0 = masked (PyTorch mask==0 -> -1e9)."""
    B, S_t, D = text.shape
    S_i = image.shape[1]
    M_t = B * S_t

    # Weights pre-arranged once: transposed to (D_in, D_out) and cast to bf16
    # (MXU peak dtype; halves DMA bytes).  Biases stay f32.
    wqT = params["wq"].T.astype(jnp.bfloat16)
    wkvT = jnp.concatenate([params["wk"].T, params["wv"].T], axis=1).astype(jnp.bfloat16)
    bkv = jnp.concatenate([params["bk"], params["bv"]])
    woT = params["wo"].T.astype(jnp.bfloat16)
    w1T = params["w1"].T.astype(jnp.bfloat16)
    w2T = params["w2"].T.astype(jnp.bfloat16)

    # 1) masked_fill + LayerNorm0 + Q projection (fused; LN output stays in VMEM)
    text2d = text.reshape(M_t, D)
    mask_col = text_mask.reshape(M_t, 1).astype(jnp.float32)
    text0_2d, q2d = pallas_mask_ln_q(text2d, mask_col,
                                     params["g0"], params["be0"],
                                     wqT, params["bq"])

    # 2) cross attention with fused K/V projection (K/V slab never hits HBM;
    #    head split/merge inside the kernel; p_attn not stored)
    if image_mask is None:
        imask = jnp.ones((B, 1, S_i), jnp.float32)
    else:
        imask = image_mask.reshape(B, 1, S_i).astype(jnp.float32)
    image_bf16 = image.astype(jnp.bfloat16)
    ctx = pallas_cross_attention(q2d.reshape(B, S_t, D), image_bf16,
                                 wkvT, bkv, imask, num_heads)         # (B, S_t, D) bf16

    # 3) fused: Wo proj + residual + LayerNorm1 + FFN + residual
    out2d = pallas_attn_out_ffn(ctx.reshape(M_t, D), text0_2d,
                                woT, params["bo"], params["g1"], params["be1"],
                                w1T, params["b1"], w2T, params["b2"])
    return out2d.reshape(B, S_t, D)


# --------------------------------------------------------------------------
# Pure-JAX reference (fp32) for verification
# --------------------------------------------------------------------------
def decoder_layer_reference(params, text, image, text_mask, image_mask, num_heads):
    D = text.shape[-1]
    d_k = D // num_heads

    def ln(x, g, b):
        mu = jnp.mean(x, -1, keepdims=True)
        var = jnp.mean((x - mu) ** 2, -1, keepdims=True)
        return (x - mu) / jnp.sqrt(var + 1e-12) * g + b

    text0 = jnp.where(text_mask[..., None] != 0, -1e9, text)
    a = ln(text0, params["g0"], params["be0"])
    q = a @ params["wq"].T + params["bq"]
    k = image @ params["wk"].T + params["bk"]
    v = image @ params["wv"].T + params["bv"]
    B, S_t, _ = q.shape
    S_i = k.shape[1]
    qh = q.reshape(B, S_t, num_heads, d_k).transpose(0, 2, 1, 3)
    kh = k.reshape(B, S_i, num_heads, d_k).transpose(0, 2, 1, 3)
    vh = v.reshape(B, S_i, num_heads, d_k).transpose(0, 2, 1, 3)
    s = jnp.einsum("bhqd,bhkd->bhqk", qh, kh) / math.sqrt(d_k)
    if image_mask is not None:
        s = jnp.where(image_mask[:, None, None, :] == 0, -1e9, s)
    p = jax.nn.softmax(s, axis=-1)
    ctx = jnp.einsum("bhqk,bhkd->bhqd", p, vh).transpose(0, 2, 1, 3).reshape(B, S_t, D)
    attn = ctx @ params["wo"].T + params["bo"]
    text1 = text0 + attn
    h = jax.nn.relu(ln(text1, params["g1"], params["be1"]) @ params["w1"].T + params["b1"])
    ff = h @ params["w2"].T + params["b2"]
    return text1 + ff


# --------------------------------------------------------------------------
# Deterministic parameter init (PyTorch nn.Linear / nn.LayerNorm shapes)
# --------------------------------------------------------------------------
def init_params(key, d_model, d_ff):
    ks = jax.random.split(key, 6)

    def lin(k, out_d, in_d):
        bound = 1.0 / math.sqrt(in_d)
        kw, kb = jax.random.split(k)
        w = jax.random.uniform(kw, (out_d, in_d), jnp.float32, -bound, bound)
        b = jax.random.uniform(kb, (out_d,), jnp.float32, -bound, bound)
        return w, b

    wq, bq = lin(ks[0], d_model, d_model)
    wk, bk = lin(ks[1], d_model, d_model)
    wv, bv = lin(ks[2], d_model, d_model)
    wo, bo = lin(ks[3], d_model, d_model)
    w1, b1 = lin(ks[4], d_ff, d_model)
    w2, b2 = lin(ks[5], d_model, d_ff)
    ones = jnp.ones((d_model,), jnp.float32)
    zeros = jnp.zeros((d_model,), jnp.float32)
    return {"g0": ones, "be0": zeros, "g1": ones, "be1": zeros,
            "wq": wq, "bq": bq, "wk": wk, "bk": bk, "wv": wv, "bv": bv,
            "wo": wo, "bo": bo, "w1": w1, "b1": b1, "w2": w2, "b2": b2}


if __name__ == "__main__":
    B, S_t, S_i, d_model, d_ff, H = 2, 8, 8, 32, 64, 4

    root = jax.random.PRNGKey(0)
    kp, kt, ki, ktm, kim = jax.random.split(root, 5)
    params = init_params(kp, d_model, d_ff)

    text = jax.random.normal(kt, (B, S_t, d_model), jnp.float32)
    image = jax.random.normal(ki, (B, S_i, d_model), jnp.float32)
    text_mask = jax.random.bernoulli(ktm, 0.2, (B, S_t))                    # True = pad
    image_mask = jax.random.bernoulli(kim, 0.8, (B, S_i)).astype(jnp.int32)  # 1 = attend

    out = decoder_layer_forward(params, text, image, text_mask, image_mask,
                                num_heads=H)
    out = jax.block_until_ready(out)

    assert out.shape == (B, S_t, d_model)
    assert bool(jnp.all(jnp.isfinite(out)))

    ref = decoder_layer_reference(params, text, image, text_mask, image_mask, H)
    rel_err = float(jnp.max(jnp.abs(out - ref) / (jnp.abs(ref) + 1.0)))
    assert rel_err < 0.2, f"mismatch vs fp32 reference: rel_err={rel_err}"

    print("KERNEL_OK")
</pallas_src>

<mosaic_0001>
module attributes {stable_mosaic.version = 11 : i64} {
  func.func @mask_ln_q_kernel(%arg0: i32, %arg1: memref<16x32xf32, #tpu.memory_space<vmem>>, %arg2: memref<16x1xf32, #tpu.memory_space<vmem>>, %arg3: memref<1x32xf32, #tpu.memory_space<vmem>>, %arg4: memref<1x32xf32, #tpu.memory_space<vmem>>, %arg5: memref<32x32xbf16, #tpu.memory_space<vmem>>, %arg6: memref<1x32xf32, #tpu.memory_space<vmem>>, %arg7: memref<16x32xf32, #tpu.memory_space<vmem>>, %arg8: memref<16x32xbf16, #tpu.memory_space<vmem>>) attributes {dimension_semantics = [#tpu.dimension_semantics<parallel>], iteration_bounds = array<i64: 1>, scalar_prefetch = 0 : i64, scratch_operands = 0 : i64, tpu.core_type = #tpu.core_type<tc>, window_params = [{transform_indices = @transform_0, window_bounds = array<i64: 16, 32>}, {transform_indices = @transform_1, window_bounds = array<i64: 16, 1>}, {pipeline_mode = #tpu.pipeline_mode<synchronous>, transform_indices = @transform_2, window_bounds = array<i64: 1, 32>}, {pipeline_mode = #tpu.pipeline_mode<synchronous>, transform_indices = @transform_3, window_bounds = array<i64: 1, 32>}, {pipeline_mode = #tpu.pipeline_mode<synchronous>, transform_indices = @transform_4, window_bounds = array<i64: 32, 32>}, {pipeline_mode = #tpu.pipeline_mode<synchronous>, transform_indices = @transform_5, window_bounds = array<i64: 1, 32>}, {transform_indices = @transform_6, window_bounds = array<i64: 16, 32>}, {transform_indices = @transform_7, window_bounds = array<i64: 16, 32>}]} {
    %c0 = arith.constant 0 : index
    %c0_0 = arith.constant 0 : index
    %0 = vector.load %arg1[%c0, %c0_0] : memref<16x32xf32, #tpu.memory_space<vmem>>, vector<16x32xf32>
    %c0_1 = arith.constant 0 : index
    %c0_2 = arith.constant 0 : index
    %1 = vector.load %arg2[%c0_1, %c0_2] : memref<16x1xf32, #tpu.memory_space<vmem>>, vector<16x1xf32>
    %cst = arith.constant 0.000000e+00 : f32
    %2 = vector.broadcast %cst : f32 to vector<16x1xf32>
    %3 = arith.cmpf one, %1, %2 : vector<16x1xf32>
    %cst_3 = arith.constant -1.000000e+09 : f32
    %4 = vector.shape_cast %3 : vector<16x1xi1> to vector<16x1xi1>
    %5 = vector.broadcast %4 : vector<16x1xi1> to vector<16x32xi1>
    %6 = vector.broadcast %cst_3 : f32 to vector<16x32xf32>
    %7 = arith.select %5, %6, %0 : vector<16x32xi1>, vector<16x32xf32>
    %cst_4 = arith.constant dense<0.000000e+00> : vector<16xf32>
    %8 = vector.multi_reduction <add>, %7, %cst_4 [1] : vector<16x32xf32> to vector<16xf32>
    %9 = vector.shape_cast %8 : vector<16xf32> to vector<16x1xf32>
    %cst_5 = arith.constant 3.200000e+01 : f32
    %10 = vector.broadcast %cst_5 : f32 to vector<16x1xf32>
    %11 = arith.divf %9, %10 : vector<16x1xf32>
    %12 = vector.broadcast %11 : vector<16x1xf32> to vector<16x32xf32>
    %13 = arith.subf %7, %12 : vector<16x32xf32>
    %14 = arith.mulf %13, %13 : vector<16x32xf32>
    %cst_6 = arith.constant dense<0.000000e+00> : vector<16xf32>
    %15 = vector.multi_reduction <add>, %14, %cst_6 [1] : vector<16x32xf32> to vector<16xf32>
    %16 = vector.shape_cast %15 : vector<16xf32> to vector<16x1xf32>
    %cst_7 = arith.constant 3.200000e+01 : f32
    %17 = vector.broadcast %cst_7 : f32 to vector<16x1xf32>
    %18 = arith.divf %16, %17 : vector<16x1xf32>
    %cst_8 = arith.constant 9.99999996E-13 : f32
    %19 = vector.broadcast %cst_8 : f32 to vector<16x1xf32>
    %20 = arith.addf %18, %19 : vector<16x1xf32>
    %21 = math.rsqrt %20 : vector<16x1xf32>
    %22 = vector.broadcast %21 : vector<16x1xf32> to vector<16x32xf32>
    %23 = arith.mulf %13, %22 : vector<16x32xf32>
    %c0_9 = arith.constant 0 : index
    %c0_10 = arith.constant 0 : index
    %24 = vector.load %arg3[%c0_9, %c0_10] : memref<1x32xf32, #tpu.memory_space<vmem>>, vector<1x32xf32>
    %25 = vector.broadcast %24 : vector<1x32xf32> to vector<16x32xf32>
    %26 = arith.mulf %23, %25 : vector<16x32xf32>
    %c0_11 = arith.constant 0 : index
    %c0_12 = arith.constant 0 : index
    %27 = vector.load %arg4[%c0_11, %c0_12] : memref<1x32xf32, #tpu.memory_space<vmem>>, vector<1x32xf32>
    %28 = vector.broadcast %27 : vector<1x32xf32> to vector<16x32xf32>
    %29 = arith.addf %26, %28 : vector<16x32xf32>
    %30 = arith.truncf %29 : vector<16x32xf32> to vector<16x32xbf16>
    %c0_13 = arith.constant 0 : index
    %c0_14 = arith.constant 0 : index
    %31 = vector.load %arg5[%c0_13, %c0_14] : memref<32x32xbf16, #tpu.memory_space<vmem>>, vector<32x32xbf16>
    %cst_15 = arith.constant dense<0.000000e+00> : vector<16x32xf32>
    %32 = tpu.matmul %30, %31, %cst_15 {dimension_numbers = #tpu.dot_dimension_numbers<[1], [0], [0], [1], [0, 0, 1, 1], [], []>} : vector<16x32xbf16>, vector<32x32xbf16>, vector<16x32xf32> -> vector<16x32xf32>
    %c0_16 = arith.constant 0 : index
    %c0_17 = arith.constant 0 : index
    %33 = vector.load %arg6[%c0_16, %c0_17] : memref<1x32xf32, #tpu.memory_space<vmem>>, vector<1x32xf32>
    %34 = vector.broadcast %33 : vector<1x32xf32> to vector<16x32xf32>
    %35 = arith.addf %32, %34 : vector<16x32xf32>
    %c0_18 = arith.constant 0 : index
    %c0_19 = arith.constant 0 : index
    %36 = vector.load %arg7[%c0_18, %c0_19] : memref<16x32xf32, #tpu.memory_space<vmem>>, vector<16x32xf32>
    tpu.vector_store %arg7[%c0_18, %c0_19], %7 {strides = array<i32>} : memref<16x32xf32, #tpu.memory_space<vmem>>, vector<16x32xf32>,
    %37 = arith.truncf %35 : vector<16x32xf32> to vector<16x32xbf16>
    %c0_20 = arith.constant 0 : index
    %c0_21 = arith.constant 0 : index
    %38 = vector.load %arg8[%c0_20, %c0_21] : memref<16x32xbf16, #tpu.memory_space<vmem>>, vector<16x32xbf16>
    tpu.vector_store %arg8[%c0_20, %c0_21], %37 {strides = array<i32>} : memref<16x32xbf16, #tpu.memory_space<vmem>>, vector<16x32xbf16>,
    return
  }
  func.func @transform_0(%arg0: i32) -> (i32, i32) {
    %c0_i32 = arith.constant 0 : i32
    %c0_i32_0 = arith.constant 0 : i32
    return %arg0, %c0_i32 : i32, i32
  }
  func.func @transform_1(%arg0: i32) -> (i32, i32) {
    %c0_i32 = arith.constant 0 : i32
    %c0_i32_0 = arith.constant 0 : i32
    return %arg0, %c0_i32 : i32, i32
  }
  func.func @transform_2(%arg0: i32) -> (i32, i32) {
    %c0_i32 = arith.constant 0 : i32
    %c0_i32_0 = arith.constant 0 : i32
    %c0_i32_1 = arith.constant 0 : i32
    return %c0_i32, %c0_i32_0 : i32, i32
  }
  func.func @transform_3(%arg0: i32) -> (i32, i32) {
    %c0_i32 = arith.constant 0 : i32
    %c0_i32_0 = arith.constant 0 : i32
    %c0_i32_1 = arith.constant 0 : i32
    return %c0_i32, %c0_i32_0 : i32, i32
  }
  func.func @transform_4(%arg0: i32) -> (i32, i32) {
    %c0_i32 = arith.constant 0 : i32
    %c0_i32_0 = arith.constant 0 : i32
    %c0_i32_1 = arith.constant 0 : i32
    return %c0_i32, %c0_i32_0 : i32, i32
  }
  func.func @transform_5(%arg0: i32) -> (i32, i32) {
    %c0_i32 = arith.constant 0 : i32
    %c0_i32_0 = arith.constant 0 : i32
    %c0_i32_1 = arith.constant 0 : i32
    return %c0_i32, %c0_i32_0 : i32, i32
  }
  func.func @transform_6(%arg0: i32) -> (i32, i32) {
    %c0_i32 = arith.constant 0 : i32
    %c0_i32_0 = arith.constant 0 : i32
    return %arg0, %c0_i32 : i32, i32
  }
  func.func @transform_7(%arg0: i32) -> (i32, i32) {
    %c0_i32 = arith.constant 0 : i32
    %c0_i32_0 = arith.constant 0 : i32
    return %arg0, %c0_i32 : i32, i32
  }
}

</mosaic_0001>

<bundles_post_ra>
// kernel: tpu_custom_call.1
= control target key start
LH: loop header
LB: loop body
LE: loop exit
PB: predicated region body
PF: predicated region fallthrough
CT: control target
= control target key end

     0   :  { %13 = vsyncpa [#allocation3], 0  ;;  %s493_s0 = inlined_call_operand.vmem [shape: f32[16,32], index: 0, kind: input, shape index: {}]   ;;  %s494_s1 = inlined_call_operand.vmem [shape: f32[16,1], index: 1, kind: input, shape index: {}]   ;;  %s495_s2 = inlined_call_operand.hbm [shape: f32[1,32], index: 2, kind: input, shape index: {}]   ;;  %s496_s3 = inlined_call_operand.hbm [shape: f32[1,32], index: 3, kind: input, shape index: {}]   ;;  %s497_s4 = inlined_call_operand.vmem [shape: bf16[32,32], index: 4, kind: input, shape index: {}]   ;;  %s498_s5 = inlined_call_operand.vmem [shape: f32[1,32], index: 5, kind: input, shape index: {}]   ;;  %s499_s6 = inlined_call_operand.hbm [shape: f32[16,32], index: 6, kind: output, shape index: {0}]   ;;  %s500_s7 = inlined_call_operand.hbm [shape: bf16[16,32], index: 7, kind: output, shape index: {1}]  }
   0x1   :  { %14 = vsyncpa [#allocation6], 0 }
   0x2   :  { %15 = vsyncpa [#allocation4], 0 }
   0x3   :  { %16 = vsyncpa [#allocation9], 0  ;;  %s366_s24 = smov [#allocation2]   ;;  %s367_s26 = smov [#allocation5]  }
   0x4   :  { %s27_s25 = sshll.u32 %s366_s24, 4  ;;  %s37_s27 = sshll.u32 %s367_s26, 4  ;;  %s28_s25 = int_to_ptr.vmem [resolvable:$true] %s27_s25  ;;  %s38_s27 = int_to_ptr.vmem [resolvable:$true] %s37_s27 }
   0x5   :  { %s270_s30 = scalar_lea.hbm %s495_s2, 16 }
   0x6   :  { %p271_p0 = scmp.ne.s32.totalorder %s495_s2, %s270_s30  ;;  %p274_p1 = scmp.lt.u32.totalorder %s270_s30, %s495_s2 }
   0x8   :  { %p276_p2 = pnand %p274_p1, %p271_p0 }
   0xa   :  { %279 = shalt.err (!%p276_p2)
}
   0xb   :  { %s280_s12 = scalar_lea.vmem %s28_s25, 16  ;;  %s284_s13 = scalar_lea.vmem %s28_s25, 32 }
   0xc   :  { %p281_p3 = scmp.ne.s32.totalorder %s28_s25, %s280_s12  ;;  %p285_p4 = scmp.lt.s32.totalorder %s28_s25, %s28_s25 }
   0xd   :  { %p286_p5 = scmp.lt.s32.totalorder %s284_s13, %s280_s12 }
   0xf   :  { %p287_p6 = por %p286_p5, %p285_p4 }
  0x11   :  { %p288_p7 = pnand %p287_p6, %p281_p3 }
  0x13   :  { %291 = shalt.err (!%p288_p7)
}
  0x14   :  { %30 = dma.hbm_to_vmem [thread:$0]  %s495_s2, 16, %s28_s25, [#allocation3]  }
  0x15   :  { %s292_s18 = scalar_lea.hbm %s496_s3, 16 }
  0x16   :  { %p293_p8 = scmp.ne.s32.totalorder %s496_s3, %s292_s18  ;;  %p296_p9 = scmp.lt.u32.totalorder %s292_s18, %s496_s3 }
  0x18   :  { %p298_p10 = pnand %p296_p9, %p293_p8 }
  0x1a   :  { %301 = shalt.err (!%p298_p10)
}
  0x1b   :  { %s302_s23 = scalar_lea.vmem %s38_s27, 16  ;;  %s306_s24 = scalar_lea.vmem %s38_s27, 32 }
  0x1c   :  { %p303_p11 = scmp.ne.s32.totalorder %s38_s27, %s302_s23  ;;  %p307_p12 = scmp.lt.s32.totalorder %s38_s27, %s38_s27 }
  0x1d   :  { %p308_p13 = scmp.lt.s32.totalorder %s306_s24, %s302_s23 }
  0x1f   :  { %p309_p0 = por %p308_p13, %p307_p12 }
  0x21   :  { %p310_p1 = pnand %p309_p0, %p303_p11 }
  0x23   :  { %313 = shalt.err (!%p310_p1)
}
  0x24   :  { %40 = dma.hbm_to_vmem [thread:$0]  %s496_s3, 16, %s38_s27, [#allocation6]  }
  0x25   :  { %358 = dma.done.wait [#allocation3], 16  }
  0x26   :  { %359 = vsyncadd [#allocation3], 4294967280 }
  0x27   :  { %360 = dma.done.wait [#allocation6], 16  }
  0x28   :  { %361 = vsyncadd [#allocation6], 4294967280  ;;  %v368_v0 = vmov 0   ;;  %v54_v1 = vld [vmem:[%s494_s1] sm:$0xff]  ;;  %v55_v2 = vld [vmem:[%s494_s1 + $0x8] sm:$0xff]  ;;  %vm70_vm2 = vcmask 261120  }
  0x29   :  { %263 = vset.pattern.permute.xlu0 %v368_v0  ;;  %vm56_vm0 = vcmp.ne.f32.partialorder %v54_v1, 0.0  ;;  %vm57_vm1 = vcmp.ne.f32.partialorder %v55_v2, 0.0  ;;  %v52_v5 = vld [vmem:[%s493_s0] sm:$0xff]  ;;  %v53_v8 = vld [vmem:[%s493_s0 + $0x8] sm:$0xff]  ;;  %v369_v24 = vmov 0.0   ;;  %vm370_vm5 = vmmov 0  }
  0x2a   :  { %v58_v3 = vsel %vm56_vm0, 1, %v368_v0  ;;  %v59_v4 = vsel %vm57_vm1, 1, %v368_v0  ;;  %v264_v23 = vld [vmem:[%s497_s4] sm:$0xff]   ;;  %244 = vmatprep.subr.bf16.mxu0 %v369_v24  ;;  %v265_v25 = vld [vmem:[%s497_s4 + $0x8] sm:$0xff]   ;;  %248 = vmatprep.mubr.msk.bf16.mxu0 %vm370_vm5, %v369_v24  ;;  %s371_s4 = smov [#allocation7]  }
  0x2b   :  { %61 = vperm.xlu0 %263, %v58_v3   ;;  %245 = vmatpush3.bf16.msra.mxu0 %v264_v23  ;;  %v231_v34 = vld [vmem:[#allocation2] ss:$0 sm:$0xff]  ;;  %v232_v38 = vld [vmem:[#allocation5] ss:$0 sm:$0xff]  ;;  %s202_s12 = sshll.u32 %s371_s4, 4  ;;  %s203_s12 = int_to_ptr.vmem [resolvable:$true] %s202_s12 }
  0x2c   :  { %246 = vmatprep.subr.bf16.mxu0 %v369_v24  ;;  %s314_s13 = scalar_lea.vmem %s203_s12, 256  ;;  %p319_p3 = scmp.lt.s32.totalorder %s203_s12, %s203_s12 }
  0x2d   :  { %p315_p2 = scmp.ne.s32.totalorder %s203_s12, %s314_s13  ;;  %p320_p4 = scmp.lt.s32.totalorder %s314_s13, %s314_s13 }
  0x2f   :  { %64 = vperm.xlu0 %263, %v59_v4   ;;  %247 = vmatpush3.bf16.msra.mxu0 %v265_v25  ;;  %p321_p5 = por %p320_p4, %p319_p3 }
  0x31   :  { %p322_p6 = pnand %p321_p5, %p315_p2 }
  0xaa   :  { %v62_v6 = vpop.permute.xlu0 %61 }
  0xab   :  { %vm66_vm3 = vcmp.eq.s32.totalorder %v62_v6, 1 }
  0xac   :  { %v68_v7 = vsel %vm66_vm3, -1e+09, %v52_v5 }
  0xad   :  { %184 = vst.msk [vmem:[#allocation7] sm:$0xff] %vm70_vm2, %v68_v7  ;;  %v71_v9 = vsel %vm70_vm2, %v68_v7, 0.0 }
  0xae   :  { %v65_v10 = vpop.permute.xlu0 %64  ;;  %72 = vadd.xlane.f32.xlu1 %v71_v9 }
  0xaf   :  { %vm67_vm4 = vcmp.eq.s32.totalorder %v65_v10, 1 }
  0xb0   :  { %v69_v11 = vsel %vm67_vm4, -1e+09, %v53_v8 }
  0xb1   :  { %185 = vst.msk [vmem:[#allocation7 + $0x8] sm:$0xff] %vm70_vm2, %v69_v11  ;;  %v74_v12 = vsel %vm70_vm2, %v69_v11, 0.0 }
  0xb2   :  { %75 = vadd.xlane.f32.xlu1 %v74_v12 }
 0x13b   :  { %v73_v13 = vpop.xlane.xlu1 %72 }
 0x13c   :  { %v78_v14 = vmul.f32 0.03125, %v73_v13 }
 0x13e   :  { %v80_v15 = vsub.f32 %v68_v7, %v78_v14 }
 0x13f   :  { %v76_v16 = vpop.xlane.xlu1 %75 }
 0x140   :  { %v79_v17 = vmul.f32 0.03125, %v76_v16  ;;  %v82_v18 = vmul.f32 %v80_v15, %v80_v15 }
 0x142   :  { %v81_v19 = vsub.f32 %v69_v11, %v79_v17  ;;  %v84_v20 = vsel %vm70_vm2, %v82_v18, 0.0 }
 0x143   :  { %85 = vadd.xlane.f32.xlu0 %v84_v20 }
 0x144   :  { %v83_v21 = vmul.f32 %v81_v19, %v81_v19 }
 0x146   :  { %v87_v22 = vsel %vm70_vm2, %v83_v21, 0.0 }
 0x147   :  { %88 = vadd.xlane.f32.xlu1 %v87_v22 }
 0x1d0   :  { %v86_v26 = vpop.xlane.xlu0 %85 }
 0x1d1   :  { %v90_v27 = vmul.f32 0.03125, %v86_v26 }
 0x1d3   :  { %v92_v28 = vadd.f32 1e-12, %v90_v27 }
 0x1d4   :  { %v89_v29 = vpop.xlane.xlu1 %88 }
 0x1d5   :  { %266 = vrsqrt.f32 %v92_v28  ;;  %v91_v30 = vmul.f32 0.03125, %v89_v29 }
 0x1d7   :  { %v93_v31 = vadd.f32 1e-12, %v91_v30 }
 0x1d9   :  { %268 = vrsqrt.f32 %v93_v31 }
 0x1df   :  { %v267_v32 = vpop.eup %266 }
 0x1e0   :  { %v96_v33 = vmul.f32 %v267_v32, %v80_v15 }
 0x1e2   :  { %v105_v37 = vmul.f32 %v231_v34, %v96_v33 }
 0x1e3   :  { %v269_v35 = vpop.eup %268 }
 0x1e4   :  { %v97_v36 = vmul.f32 %v269_v35, %v81_v19  ;;  %v114_v40 = vadd.f32 %v232_v38, %v105_v37 }
 0x1e6   :  { %v106_v39 = vmul.f32 %v231_v34, %v97_v36 }
 0x1e8   :  { %v115_v41 = vadd.f32 %v232_v38, %v106_v39 }
 0x1ea   :  { %v116_v42 = vpack.c.bf16 %v115_v41, %v114_v40 }
 0x1ec   :  { %249 = vmatmul.mubr.msk.bf16.vlgmr.msra.gmra.mrb[0].mxu0 %vm70_vm2, %v116_v42 }
 0x1ed   :  { %325 = shalt.err (!%p322_p6)
}
 0x1ee   :  { %s326_s16 = scalar_lea.hbm %s499_s6, 256 }
 0x1ef   :  { %p327_p7 = scmp.ne.s32.totalorder %s499_s6, %s326_s16  ;;  %p330_p8 = scmp.lt.u32.totalorder %s326_s16, %s499_s6 }
 0x1f1   :  { %p332_p9 = pnand %p330_p8, %p327_p7 }
 0x1f3   :  { %335 = shalt.err (!%p332_p9)
}
 0x1f4   :  { %s372_s21 = smov 128   ;;  %s373_s22 = smov 8   ;;  %v233_v43 = vld [vmem:[%s498_s5] ss:$0 sm:$0xff]  ;;  %vm194_vm6 = vcmask 257024  }
 0x1f5   :  { %208 = dma.vmem_to_hbm [thread:$0]  %s203_s12, 256, %s499_s6, [#allocation4], %s372_s21, %s372_s21, %s373_s22  }
 0x1f6   :  { %s374_s26 = smov [#allocation8]  }
 0x1f7   :  { %s214_s28 = sshll.u32 %s374_s26, 4  ;;  %s215_s28 = int_to_ptr.vmem [resolvable:$true] %s214_s28 }
 0x1f8   :  { %s336_s29 = scalar_lea.vmem %s215_s28, 128  ;;  %p341_p11 = scmp.lt.s32.totalorder %s215_s28, %s215_s28 }
 0x1f9   :  { %p337_p10 = scmp.ne.s32.totalorder %s215_s28, %s336_s29  ;;  %p342_p12 = scmp.lt.s32.totalorder %s336_s29, %s336_s29 }
 0x1fb   :  { %p343_p13 = por %p342_p12, %p341_p11 }
 0x1fd   :  { %p344_p0 = pnand %p343_p13, %p337_p10 }
 0x2bf   :  { %v177_v44 = vpop.f32.mrb[0].mxu0 }
 0x2c0   :  { %v178_v45 = vadd.f32 %v233_v43, %v177_v44  ;;  %v250_v46 = vpop.f32.mrb[1].mxu0 }
 0x2c1   :  { %v180_v47 = vpop.f32.mrb[2].mxu0 }
 0x2c2   :  { %v239_v48 = vpack.c.bf16 %v178_v45, %v178_v45  ;;  %v181_v49 = vadd.f32 %v233_v43, %v180_v47  ;;  %v251_v50 = vpop.f32.mrb[3].mxu0 }
 0x2c4   :  { %195 = vst.msk [vmem:[#allocation8] sm:$0xf] %vm194_vm6, %v239_v48  ;;  %v240_v51 = vpack.c.bf16 %v181_v49, %v181_v49 }
 0x2c6   :  { %196 = vst.msk [vmem:[#allocation8 + $0x4] sm:$0xf] %vm194_vm6, %v240_v51 }
 0x2c7   :  { %347 = shalt.err (!%p344_p0)
}
 0x2c8   :  { %s348_s30 = scalar_lea.hbm %s500_s7, 128 }
 0x2c9   :  { %p349_p1 = scmp.ne.s32.totalorder %s500_s7, %s348_s30  ;;  %p352_p2 = scmp.lt.u32.totalorder %s348_s30, %s500_s7 }
 0x2cb   :  { %p354_p3 = pnand %p352_p2, %p349_p1 }
 0x2cd   :  { %357 = shalt.err (!%p354_p3)
}
 0x2ce   :  { %s375_s0 = smov 64   ;;  %s376_s1 = smov 4  }
 0x2cf   :  { %220 = dma.vmem_to_hbm [thread:$0]  %s215_s28, 128, %s500_s7, [#allocation9], %s375_s0, %s375_s0, %s376_s1  }
 0x2d0   :  { %362 = dma.done.wait [#allocation4], 256  }
 0x2d1   :  { %363 = vsyncadd [#allocation4], 4294967040 }
 0x2d2   :  { %364 = dma.done.wait [#allocation9], 128  }
 0x2d3   :  { %365 = vsyncadd [#allocation9], 4294967168 }
 0x2d4   :  { %227 = vsyncpa [#allocation3], 1 }
 0x2d5   :  { %228 = vsyncpa [#allocation6], 1 }
 0x2d6   :  { %229 = vsyncpa [#allocation4], 1 }
 0x2d7   :  { %230 = vsyncpa [#allocation9], 1 }

</bundles_post_ra>
